<compile_context>
chip_gen: v5e
topology: v5e:2x2
jax: 0.10.0
libtpu: 0.0.40
codegen_flags: <defaults>
</compile_context>

<pallas_src>
import jax
import jax.numpy as jnp
from jax.experimental import pallas as pl
from jax.experimental.pallas import tpu as pltpu


def _alpha_kernel(log_alpha_ref, out_ref):
    # Pure scalar copy on the SMEM path — never touches a vreg or a VMEM tile.
    out_ref[0] = log_alpha_ref[0]


def alpha_forward(log_alpha: jax.Array) -> jax.Array:
    """Recommended equivalent of Alpha.forward(): identity on the parameter.

    The forward moves exactly 4 bytes, so the fastest implementation is no
    kernel at all (XLA folds this to zero work); callers should fuse the
    parameter read (e.g. exp(log_alpha)) into the consumer kernel.
    """
    return log_alpha


def alpha_forward_pallas(log_alpha: jax.Array) -> jax.Array:
    """Standalone Pallas kernel version of Alpha.forward() (if an op is required)."""
    assert log_alpha.shape == (1,), "expected a (1,)-shaped scalar parameter"
    return pl.pallas_call(
        _alpha_kernel,
        out_shape=jax.ShapeDtypeStruct((1,), log_alpha.dtype),
        in_specs=[pl.BlockSpec(memory_space=pltpu.MemorySpace.SMEM)],
        out_specs=pl.BlockSpec(memory_space=pltpu.MemorySpace.SMEM),
        input_output_aliases={0: 0},  # output aliases the parameter buffer
    )(log_alpha)


if __name__ == "__main__":
    key = jax.random.PRNGKey(0)

    # Parameter init matching torch.zeros(1) in Alpha.__init__.
    log_alpha_init = jnp.zeros((1,), dtype=jnp.float32)

    # Fast path (recommended): plain identity.
    out_fast = jax.block_until_ready(alpha_forward(log_alpha_init))
    assert out_fast.shape == (1,) and out_fast.dtype == jnp.float32
    assert jnp.array_equal(out_fast, log_alpha_init), "mismatch vs reference (identity)"

    # Standalone Pallas kernel path, verified on both the zero-init and a
    # non-trivial ("trained") parameter value.
    out_kernel_init = jax.block_until_ready(alpha_forward_pallas(log_alpha_init))
    assert out_kernel_init.shape == (1,) and out_kernel_init.dtype == jnp.float32
    assert jnp.array_equal(out_kernel_init, log_alpha_init), "mismatch vs reference (init)"

    log_alpha_trained = jax.random.normal(key, (1,), dtype=jnp.float32)
    out_kernel_trained = jax.block_until_ready(alpha_forward_pallas(log_alpha_trained))
    assert out_kernel_trained.shape == (1,) and out_kernel_trained.dtype == jnp.float32
    assert jnp.array_equal(out_kernel_trained, log_alpha_trained), "mismatch vs reference"

    print("KERNEL_OK")
</pallas_src>

<mosaic_0001>
module attributes {stable_mosaic.version = 11 : i64} {
  func.func @_alpha_kernel(%arg0: memref<1xf32, #tpu.memory_space<smem>>, %arg1: memref<1xf32, #tpu.memory_space<smem>>) attributes {dimension_semantics = [], scalar_prefetch = 0 : i64, scratch_operands = 0 : i64, tpu.core_type = #tpu.core_type<tc>} {
    %c0 = arith.constant 0 : index
    %0 = memref.load %arg0[%c0] : memref<1xf32, #tpu.memory_space<smem>>
    %c0_0 = arith.constant 0 : index
    %1 = memref.load %arg1[%c0_0] : memref<1xf32, #tpu.memory_space<smem>>
    memref.store %0, %arg1[%c0_0] : memref<1xf32, #tpu.memory_space<smem>>
    return
  }
}

</mosaic_0001>

<bundles_post_ra>
// kernel: tpu_custom_call.1
= control target key start
LH: loop header
LB: loop body
LE: loop exit
PB: predicated region body
PF: predicated region fallthrough
CT: control target
= control target key end

     0   :  { %7 = vsyncpa [#allocation4], 0  ;;  %s43_s11 = smov [#allocation3]   ;;  %s60_s0 = inlined_call_operand.<no memory space> [shape: f32[1], index: 0, kind: input, shape index: {}, may-alias: {0,1}]   ;;  %s61_s1 = inlined_call_operand.hbm [shape: f32[1], index: 1, kind: output, shape index: {}, may-alias: {0,1}]  }
   0x1   :  { %12 = sst [smem:[#allocation3]] %s60_s0  ;;  %s18_s10 = sshll.u32 %s61_s1, 4  ;;  %s19_s10 = int_to_ptr.hbm [resolvable:$true] %s18_s10 }
   0x2   :  { %21 = dma.smem_to_hbm %s43_s11, 16, %s19_s10, [#allocation4]  }
   0x3   :  { %41 = dma.done.wait [#allocation4], 16  }
   0x4   :  { %42 = vsyncadd [#allocation4], 4294967280 }
   0x5   :  { %26 = sfence }
   0x6   :  { %27 = vsyncpa [#allocation4], 1 }

</bundles_post_ra>
